<compile_context>
chip_gen: v5e
topology: v5e:2x2
jax: 0.10.0
libtpu: 0.0.40
codegen_flags: <defaults>
</compile_context>

<pallas_src>
import jax
import jax.numpy as jnp
import numpy as np
from jax.experimental import pallas as pl
from jax.experimental.pallas import tpu as pltpu

# ---- model / problem sizes (small, consistent with the module) ----
VOCAB = 32        # vocab_size
EMBED = 16        # embed_size
HIDDEN = 32       # hidden_size
NUM_LAYERS = 3    # MCTS_MLP num_layers (SequenceEncoder uses its default 3)
SEQ_LEN = 8       # input_seq_size
BATCH = 2
N_TOKENS = 4      # number of term tokens per example (x.shape[1])

LANES = 128       # lane-dense layout width
VALUE_COL = 64    # output lane carrying the value-head scalar
BM = 8            # batch rows per grid step (full f32 sublane tile)

assert VOCAB + HIDDEN <= VALUE_COL < LANES


def _r8(n):
    return ((n + 7) // 8) * 8


def _build_layout():
    """Compact slab layout: each weight block keeps only its valid fan-in rows."""
    specs = [
        ("enc0a", SEQ_LEN), ("enc0b", SEQ_LEN),      # encoder layer 0 (split input)
        ("enc1", EMBED), ("enc2", EMBED),            # encoder layers 1, 2
        ("emb", VOCAB),                              # embedding table
        ("m0a", EMBED), ("m0b", EMBED),              # main MLP layer 0 (split input)
        ("m1", HIDDEN), ("m2", HIDDEN),              # main MLP layers 1, 2
        ("head", HIDDEN),                            # choice head | value-head layer 0
    ]
    offs, r = {}, 0
    for name, fan_in in specs:
        nr = _r8(fan_in)
        offs[name] = (r, nr)
        r += nr
    return offs, r


W_OFF, BIAS_ROW0 = _build_layout()
N_BIAS_ROWS = 8
(B_ENC0, B_ENC1, B_ENC2, B_M0, B_M1, B_M2, B_HEAD, B_VROW) = range(N_BIAS_ROWS)
SLAB_ROWS = BIAS_ROW0 + N_BIAS_ROWS          # 216 rows (multiple of 8, ~108 KB f32)
assert BIAS_ROW0 % 8 == 0


# --------------------------------- kernel ---------------------------------
def _mcts_mlp_kernel(ids_ref, seq_ref, slab_ref, out_ref):
    f32 = jnp.float32
    relu = lambda a: jnp.maximum(a, 0.0)
    bm = out_ref.shape[0]

    def mm(a, name):
        # Compact weight block: slice the activation to the block's fan-in.
        r0, nr = W_OFF[name]
        return jnp.dot(a[:, :nr], slab_ref[r0:r0 + nr, :],
                       preferred_element_type=f32)

    biases = slab_ref[BIAS_ROW0:BIAS_ROW0 + N_BIAS_ROWS, :]   # one aligned (8,128) load
    b = lambda i: biases[i:i + 1, :]

    lane = jax.lax.broadcasted_iota(jnp.int32, (bm, LANES), 1)

    # ---------------- SequenceEncoder (no attention, no sliding window) ------
    seq = seq_ref[...]                                   # (BM, 128); valid lanes [0, SEQ_LEN)
    # F.normalize(seq, p=2, dim=-1) with eps=1e-12; padded lanes are zero.
    norm = jnp.sqrt(jnp.sum(seq * seq, axis=-1, keepdims=True))
    seq_n = seq / jnp.maximum(norm, 1e-12)
    # safe_log(|seq|) = log(|seq| + 1e-7); only lanes [0, SEQ_LEN) reach the matmul.
    seq_log = jnp.log(jnp.abs(seq) + 1e-7)

    # concat([seq_n, seq_log]) @ ew0 == seq_n @ ew0[:L] + seq_log @ ew0[L:]
    h = relu(mm(seq_n, "enc0a") + mm(seq_log, "enc0b") + b(B_ENC0))
    h = relu(mm(h, "enc1") + b(B_ENC1))
    encoded = mm(h, "enc2") + b(B_ENC2)                  # valid lanes [0, EMBED)

    # ---------------- Embedding lookup + mean over tokens --------------------
    # counts[b, v] = (1/T) * #{t : ids[b, t] == v};  terms = counts @ emb.
    # TODO(synk): PyTorch nn.Embedding raises on out-of-range ids; here an
    # out-of-range id silently contributes a zero embedding instead.
    ids = ids_ref[...]                                   # (BM, T) int32
    n_tok = ids.shape[1]
    counts = jnp.zeros((bm, LANES), f32)
    for t in range(n_tok):                               # tiny (T=4), unrolled VPU compares
        counts = counts + (ids[:, t:t + 1] == lane).astype(f32)
    counts = counts * (1.0 / n_tok)
    terms = mm(counts, "emb")                            # valid lanes [0, EMBED)

    # ---------------- Main MLP ------------------------------------------------
    # concat([encoded, terms]) @ mw0 == encoded @ mw0[:E] + terms @ mw0[E:]
    h = relu(mm(encoded, "m0a") + mm(terms, "m0b") + b(B_M0))
    h = relu(mm(h, "m1") + b(B_M1))
    h = mm(h, "m2") + b(B_M2)                            # valid lanes [0, HIDDEN)

    # ---------------- Fused heads ---------------------------------------------
    # W_HEAD packs choice_head (cols [0,VOCAB)) and value-head layer 0
    # (cols [VOCAB, VOCAB+HIDDEN)); bias row also carries a 1.0 at lane
    # VALUE_COL so the value bias vb1 rides the lane reduction below.
    head = mm(h, "head") + b(B_HEAD)                     # (BM, 128)

    # choice head: mask non-logit lanes to -inf, softmax over the row.
    logits = jnp.where(lane < VOCAB, head, -jnp.inf)
    m = jnp.max(logits, axis=-1, keepdims=True)
    e = jnp.exp(logits - m)
    probs = e / jnp.sum(e, axis=-1, keepdims=True)

    # value head layer 1: sum_l relu(head)[:, l] * vrow[l]
    #   lanes [VOCAB, VOCAB+HIDDEN): relu(h @ vw0 + vb0) * vw1
    #   lane VALUE_COL:              relu(1.0) * vb1
    vrow = b(B_VROW)
    value = jnp.sum(relu(head) * vrow, axis=-1, keepdims=True)   # (BM, 1)

    # lane-dense (BM, 128) store: probs in [0, VOCAB), value at VALUE_COL
    out_ref[...] = jnp.where(lane == VALUE_COL, value, probs)


# --------------------------- host-side param packing ---------------------------
def pack_params(params):
    """Pack all weights/biases into one compact (SLAB_ROWS, 128) f32 slab."""
    (emb, ew0, eb0, ew1, eb1, ew2, eb2,
     mw0, mb0, mw1, mb1, mw2, mb2, cw, cb, vw0, vb0, vw1, vb1) = params

    slab = np.zeros((SLAB_ROWS, LANES), np.float32)

    def put(name, W, c0=0):
        r0, nr = W_OFF[name]
        Wn = np.asarray(W, np.float32)
        assert Wn.shape[0] <= nr and c0 + Wn.shape[1] <= LANES
        slab[r0:r0 + Wn.shape[0], c0:c0 + Wn.shape[1]] = Wn

    put("enc0a", ew0[:SEQ_LEN])          # seq_n part of encoder layer 0
    put("enc0b", ew0[SEQ_LEN:])          # seq_log part of encoder layer 0
    put("enc1", ew1)
    put("enc2", ew2)
    put("emb", emb)
    put("m0a", mw0[:EMBED])              # encoded part of main MLP layer 0
    put("m0b", mw0[EMBED:])              # terms part of main MLP layer 0
    put("m1", mw1)
    put("m2", mw2)
    put("head", cw)                      # choice head in cols [0, VOCAB)
    put("head", vw0, c0=VOCAB)           # value-head layer 0 in cols [VOCAB, VOCAB+HIDDEN)

    def brow(i, vals, c0=0):
        v = np.asarray(vals, np.float32).reshape(-1)
        slab[BIAS_ROW0 + i, c0:c0 + v.shape[0]] = v

    brow(B_ENC0, eb0); brow(B_ENC1, eb1); brow(B_ENC2, eb2)
    brow(B_M0, mb0);   brow(B_M1, mb1);   brow(B_M2, mb2)
    brow(B_HEAD, cb)
    brow(B_HEAD, vb0, c0=VOCAB)
    slab[BIAS_ROW0 + B_HEAD, VALUE_COL] = 1.0          # ones-lane for the value bias
    brow(B_VROW, vw1, c0=VOCAB)                        # value-head layer 1 weights
    slab[BIAS_ROW0 + B_VROW, VALUE_COL] = float(np.asarray(vb1).reshape(()))

    return jnp.asarray(slab)


# ------------------------------ forward wrapper ------------------------------
def _forward(slab, x_ids, seq):
    """slab: pack_params output; x_ids: (B, T) int ids; seq: (B, SEQ_LEN)."""
    if x_ids.ndim == 1:
        x_ids = x_ids.reshape(1, -1)
    assert seq.shape[-1] == SEQ_LEN
    B, T = x_ids.shape
    Bp = ((B + BM - 1) // BM) * BM               # pad batch to a multiple of BM

    ids = jnp.zeros((Bp, T), jnp.int32).at[:B].set(x_ids.astype(jnp.int32))
    seq_pad = jnp.zeros((Bp, LANES), jnp.float32).at[:B, :SEQ_LEN].set(
        seq.astype(jnp.float32))

    out = pl.pallas_call(
        _mcts_mlp_kernel,
        out_shape=jax.ShapeDtypeStruct((Bp, LANES), jnp.float32),
        grid_spec=pltpu.PrefetchScalarGridSpec(
            num_scalar_prefetch=0,
            grid=(Bp // BM,),
            in_specs=[
                pl.BlockSpec((BM, T), lambda i: (i, 0)),
                pl.BlockSpec((BM, LANES), lambda i: (i, 0)),
                # Constant block index: the slab is DMA'd once and stays
                # VMEM-resident across all batch-grid steps.
                pl.BlockSpec((SLAB_ROWS, LANES), lambda i: (0, 0)),
            ],
            out_specs=pl.BlockSpec((BM, LANES), lambda i: (i, 0)),
        ),
        compiler_params=pltpu.CompilerParams(
            dimension_semantics=("parallel",)),     # shard batch across TCs on v7x
    )(ids, seq_pad, slab)

    probs = out[:B, :VOCAB]
    value = out[:B, VALUE_COL:VALUE_COL + 1]
    return probs, value


mcts_mlp_forward = jax.jit(_forward)


# ------------------------- deterministic parameter init -------------------------
def init_params(key):
    def linear(k, fan_in, fan_out):
        k1, k2 = jax.random.split(k)
        bound = 1.0 / (fan_in ** 0.5)
        W = jax.random.uniform(k1, (fan_in, fan_out), jnp.float32, -bound, bound)
        b = jax.random.uniform(k2, (1, fan_out), jnp.float32, -bound, bound)
        return W, b

    keys = jax.random.split(key, 10)
    emb = jax.random.normal(keys[0], (VOCAB, EMBED), jnp.float32)   # nn.Embedding ~ N(0,1)
    ew0, eb0 = linear(keys[1], 2 * SEQ_LEN, EMBED)   # encoder MLP (num_layers=3)
    ew1, eb1 = linear(keys[2], EMBED, EMBED)
    ew2, eb2 = linear(keys[3], EMBED, EMBED)
    mw0, mb0 = linear(keys[4], 2 * EMBED, HIDDEN)    # main MLP (num_layers=3)
    mw1, mb1 = linear(keys[5], HIDDEN, HIDDEN)
    mw2, mb2 = linear(keys[6], HIDDEN, HIDDEN)
    cw, cb = linear(keys[7], HIDDEN, VOCAB)          # choice head
    vw0, vb0 = linear(keys[8], HIDDEN, HIDDEN)       # value head
    vw1, vb1 = linear(keys[9], HIDDEN, 1)
    return (emb, ew0, eb0, ew1, eb1, ew2, eb2,
            mw0, mb0, mw1, mb1, mw2, mb2, cw, cb, vw0, vb0, vw1, vb1)


# ------------------------- pure-JAX reference (for checking) -------------------
def reference_forward(params, x_ids, seq):
    (emb, ew0, eb0, ew1, eb1, ew2, eb2,
     mw0, mb0, mw1, mb1, mw2, mb2, cw, cb, vw0, vb0, vw1, vb1) = params
    if x_ids.ndim == 1:
        x_ids = x_ids.reshape(1, -1)
    seq = seq.astype(jnp.float32)
    norm = jnp.sqrt(jnp.sum(seq * seq, axis=-1, keepdims=True))
    seq_n = seq / jnp.maximum(norm, 1e-12)
    seq_log = jnp.log(jnp.abs(seq) + 1e-7)
    enc_in = jnp.concatenate([seq_n, seq_log], axis=-1)
    h = jnp.maximum(enc_in @ ew0 + eb0, 0.0)
    h = jnp.maximum(h @ ew1 + eb1, 0.0)
    encoded = h @ ew2 + eb2
    terms = emb[x_ids].mean(axis=1)
    z = jnp.concatenate([encoded, terms], axis=-1)
    h = jnp.maximum(z @ mw0 + mb0, 0.0)
    h = jnp.maximum(h @ mw1 + mb1, 0.0)
    h = h @ mw2 + mb2
    probs = jax.nn.softmax(h @ cw + cb, axis=-1)
    vh = jnp.maximum(h @ vw0 + vb0, 0.0)
    value = vh @ vw1 + vb1
    return probs, value


if __name__ == "__main__":
    key = jax.random.PRNGKey(0)
    k_ids, k_seq, k_params, k_ids2, k_seq2 = jax.random.split(key, 5)

    x_ids = jax.random.randint(k_ids, (BATCH, N_TOKENS), 0, VOCAB, dtype=jnp.int32)
    seq = jax.random.normal(k_seq, (BATCH, SEQ_LEN), jnp.float32)
    params = init_params(k_params)

    slab = pack_params(params)                 # host-side, once
    probs, value = mcts_mlp_forward(slab, x_ids, seq)
    jax.block_until_ready((probs, value))

    probs_ref, value_ref = reference_forward(params, x_ids, seq)
    np.testing.assert_allclose(np.asarray(probs), np.asarray(probs_ref), rtol=1e-4, atol=1e-5)
    np.testing.assert_allclose(np.asarray(value), np.asarray(value_ref), rtol=1e-4, atol=1e-4)
    assert probs.shape == (BATCH, VOCAB) and value.shape == (BATCH, 1)

    # Larger batch (19 -> padded 24, grid=(3,)) exercises the VMEM-resident
    # slab + multi-step batch grid path.
    B2 = 19
    x_ids2 = jax.random.randint(k_ids2, (B2, N_TOKENS), 0, VOCAB, dtype=jnp.int32)
    seq2 = jax.random.normal(k_seq2, (B2, SEQ_LEN), jnp.float32)
    probs2, value2 = mcts_mlp_forward(slab, x_ids2, seq2)
    jax.block_until_ready((probs2, value2))
    probs2_ref, value2_ref = reference_forward(params, x_ids2, seq2)
    np.testing.assert_allclose(np.asarray(probs2), np.asarray(probs2_ref), rtol=1e-4, atol=1e-5)
    np.testing.assert_allclose(np.asarray(value2), np.asarray(value2_ref), rtol=1e-4, atol=1e-4)

    print("KERNEL_OK")
</pallas_src>

<mosaic_0001>
module attributes {stable_mosaic.version = 11 : i64} {
  func.func @_mcts_mlp_kernel(%arg0: i32, %arg1: memref<8x4xi32, #tpu.memory_space<vmem>>, %arg2: memref<8x128xf32, #tpu.memory_space<vmem>>, %arg3: memref<216x128xf32, #tpu.memory_space<vmem>>, %arg4: memref<8x128xf32, #tpu.memory_space<vmem>>) attributes {dimension_semantics = [#tpu.dimension_semantics<parallel>], iteration_bounds = array<i64: 1>, scalar_prefetch = 0 : i64, scratch_operands = 0 : i64, tpu.core_type = #tpu.core_type<tc>, window_params = [{transform_indices = @transform_0, window_bounds = array<i64: 8, 4>}, {transform_indices = @transform_1, window_bounds = array<i64: 8, 128>}, {pipeline_mode = #tpu.pipeline_mode<synchronous>, transform_indices = @transform_2, window_bounds = array<i64: 216, 128>}, {transform_indices = @transform_3, window_bounds = array<i64: 8, 128>}]} {
    %c208 = arith.constant 208 : index
    %c0 = arith.constant 0 : index
    %0 = vector.load %arg3[%c208, %c0] : memref<216x128xf32, #tpu.memory_space<vmem>>, vector<8x128xf32>
    %1 = tpu.iota {dimensions = array<i32: 1>} : vector<8x128xi32>
    %c0_0 = arith.constant 0 : index
    %c0_1 = arith.constant 0 : index
    %2 = vector.load %arg2[%c0_0, %c0_1] : memref<8x128xf32, #tpu.memory_space<vmem>>, vector<8x128xf32>
    %3 = arith.mulf %2, %2 : vector<8x128xf32>
    %cst = arith.constant dense<0.000000e+00> : vector<8xf32>
    %4 = vector.multi_reduction <add>, %3, %cst [1] : vector<8x128xf32> to vector<8xf32>
    %5 = vector.shape_cast %4 : vector<8xf32> to vector<8x1xf32>
    %6 = math.sqrt %5 : vector<8x1xf32>
    %cst_2 = arith.constant 9.99999996E-13 : f32
    %7 = vector.broadcast %cst_2 : f32 to vector<8x1xf32>
    %8 = arith.maximumf %6, %7 : vector<8x1xf32>
    %9 = vector.broadcast %8 : vector<8x1xf32> to vector<8x128xf32>
    %10 = arith.divf %2, %9 : vector<8x128xf32>
    %11 = math.absf %2 : vector<8x128xf32>
    %cst_3 = arith.constant 1.000000e-07 : f32
    %12 = vector.broadcast %cst_3 : f32 to vector<8x128xf32>
    %13 = arith.addf %11, %12 : vector<8x128xf32>
    %14 = math.log %13 : vector<8x128xf32>
    %15 = vector.extract_strided_slice %10 {offsets = [0, 0], sizes = [8, 8], strides = [1, 1]} : vector<8x128xf32> to vector<8x8xf32>
    %c0_4 = arith.constant 0 : index
    %c0_5 = arith.constant 0 : index
    %16 = vector.load %arg3[%c0_4, %c0_5] : memref<216x128xf32, #tpu.memory_space<vmem>>, vector<8x128xf32>
    %cst_6 = arith.constant dense<0.000000e+00> : vector<8x128xf32>
    %17 = tpu.matmul %15, %16, %cst_6 {dimension_numbers = #tpu.dot_dimension_numbers<[1], [0], [0], [1], [0, 0, 1, 1], [], []>} : vector<8x8xf32>, vector<8x128xf32>, vector<8x128xf32> -> vector<8x128xf32>
    %18 = vector.extract_strided_slice %14 {offsets = [0, 0], sizes = [8, 8], strides = [1, 1]} : vector<8x128xf32> to vector<8x8xf32>
    %c8 = arith.constant 8 : index
    %c0_7 = arith.constant 0 : index
    %19 = vector.load %arg3[%c8, %c0_7] : memref<216x128xf32, #tpu.memory_space<vmem>>, vector<8x128xf32>
    %cst_8 = arith.constant dense<0.000000e+00> : vector<8x128xf32>
    %20 = tpu.matmul %18, %19, %cst_8 {dimension_numbers = #tpu.dot_dimension_numbers<[1], [0], [0], [1], [0, 0, 1, 1], [], []>} : vector<8x8xf32>, vector<8x128xf32>, vector<8x128xf32> -> vector<8x128xf32>
    %21 = arith.addf %17, %20 : vector<8x128xf32>
    %22 = vector.extract_strided_slice %0 {offsets = [0, 0], sizes = [1, 128], strides = [1, 1]} : vector<8x128xf32> to vector<1x128xf32>
    %23 = vector.broadcast %22 : vector<1x128xf32> to vector<8x128xf32>
    %24 = arith.addf %21, %23 : vector<8x128xf32>
    %cst_9 = arith.constant 0.000000e+00 : f32
    %25 = vector.broadcast %cst_9 : f32 to vector<8x128xf32>
    %26 = arith.maximumf %24, %25 : vector<8x128xf32>
    %27 = vector.extract_strided_slice %26 {offsets = [0, 0], sizes = [8, 16], strides = [1, 1]} : vector<8x128xf32> to vector<8x16xf32>
    %c16 = arith.constant 16 : index
    %c0_10 = arith.constant 0 : index
    %28 = vector.load %arg3[%c16, %c0_10] : memref<216x128xf32, #tpu.memory_space<vmem>>, vector<16x128xf32>
    %cst_11 = arith.constant dense<0.000000e+00> : vector<8x128xf32>
    %29 = tpu.matmul %27, %28, %cst_11 {dimension_numbers = #tpu.dot_dimension_numbers<[1], [0], [0], [1], [0, 0, 1, 1], [], []>} : vector<8x16xf32>, vector<16x128xf32>, vector<8x128xf32> -> vector<8x128xf32>
    %30 = vector.extract_strided_slice %0 {offsets = [1, 0], sizes = [1, 128], strides = [1, 1]} : vector<8x128xf32> to vector<1x128xf32>
    %31 = vector.broadcast %30 : vector<1x128xf32> to vector<8x128xf32>
    %32 = arith.addf %29, %31 : vector<8x128xf32>
    %cst_12 = arith.constant 0.000000e+00 : f32
    %33 = vector.broadcast %cst_12 : f32 to vector<8x128xf32>
    %34 = arith.maximumf %32, %33 : vector<8x128xf32>
    %35 = vector.extract_strided_slice %34 {offsets = [0, 0], sizes = [8, 16], strides = [1, 1]} : vector<8x128xf32> to vector<8x16xf32>
    %c32 = arith.constant 32 : index
    %c0_13 = arith.constant 0 : index
    %36 = vector.load %arg3[%c32, %c0_13] : memref<216x128xf32, #tpu.memory_space<vmem>>, vector<16x128xf32>
    %cst_14 = arith.constant dense<0.000000e+00> : vector<8x128xf32>
    %37 = tpu.matmul %35, %36, %cst_14 {dimension_numbers = #tpu.dot_dimension_numbers<[1], [0], [0], [1], [0, 0, 1, 1], [], []>} : vector<8x16xf32>, vector<16x128xf32>, vector<8x128xf32> -> vector<8x128xf32>
    %38 = vector.extract_strided_slice %0 {offsets = [2, 0], sizes = [1, 128], strides = [1, 1]} : vector<8x128xf32> to vector<1x128xf32>
    %39 = vector.broadcast %38 : vector<1x128xf32> to vector<8x128xf32>
    %40 = arith.addf %37, %39 : vector<8x128xf32>
    %c0_15 = arith.constant 0 : index
    %c0_16 = arith.constant 0 : index
    %41 = vector.load %arg1[%c0_15, %c0_16] : memref<8x4xi32, #tpu.memory_space<vmem>>, vector<8x4xi32>
    %cst_17 = arith.constant 0.000000e+00 : f32
    %42 = vector.broadcast %cst_17 : f32 to vector<8x128xf32>
    %43 = vector.extract_strided_slice %41 {offsets = [0, 0], sizes = [8, 1], strides = [1, 1]} : vector<8x4xi32> to vector<8x1xi32>
    %44 = vector.broadcast %43 : vector<8x1xi32> to vector<8x128xi32>
    %45 = arith.cmpi eq, %44, %1 : vector<8x128xi32>
    %46 = arith.extui %45 : vector<8x128xi1> to vector<8x128xi32>
    %47 = arith.sitofp %46 : vector<8x128xi32> to vector<8x128xf32>
    %48 = arith.addf %42, %47 : vector<8x128xf32>
    %49 = vector.extract_strided_slice %41 {offsets = [0, 1], sizes = [8, 1], strides = [1, 1]} : vector<8x4xi32> to vector<8x1xi32>
    %50 = vector.broadcast %49 : vector<8x1xi32> to vector<8x128xi32>
    %51 = arith.cmpi eq, %50, %1 : vector<8x128xi32>
    %52 = arith.extui %51 : vector<8x128xi1> to vector<8x128xi32>
    %53 = arith.sitofp %52 : vector<8x128xi32> to vector<8x128xf32>
    %54 = arith.addf %48, %53 : vector<8x128xf32>
    %55 = vector.extract_strided_slice %41 {offsets = [0, 2], sizes = [8, 1], strides = [1, 1]} : vector<8x4xi32> to vector<8x1xi32>
    %56 = vector.broadcast %55 : vector<8x1xi32> to vector<8x128xi32>
    %57 = arith.cmpi eq, %56, %1 : vector<8x128xi32>
    %58 = arith.extui %57 : vector<8x128xi1> to vector<8x128xi32>
    %59 = arith.sitofp %58 : vector<8x128xi32> to vector<8x128xf32>
    %60 = arith.addf %54, %59 : vector<8x128xf32>
    %61 = vector.extract_strided_slice %41 {offsets = [0, 3], sizes = [8, 1], strides = [1, 1]} : vector<8x4xi32> to vector<8x1xi32>
    %62 = vector.broadcast %61 : vector<8x1xi32> to vector<8x128xi32>
    %63 = arith.cmpi eq, %62, %1 : vector<8x128xi32>
    %64 = arith.extui %63 : vector<8x128xi1> to vector<8x128xi32>
    %65 = arith.sitofp %64 : vector<8x128xi32> to vector<8x128xf32>
    %66 = arith.addf %60, %65 : vector<8x128xf32>
    %cst_18 = arith.constant 2.500000e-01 : f32
    %67 = vector.broadcast %cst_18 : f32 to vector<8x128xf32>
    %68 = arith.mulf %66, %67 : vector<8x128xf32>
    %69 = vector.extract_strided_slice %68 {offsets = [0, 0], sizes = [8, 32], strides = [1, 1]} : vector<8x128xf32> to vector<8x32xf32>
    %c48 = arith.constant 48 : index
    %c0_19 = arith.constant 0 : index
    %70 = vector.load %arg3[%c48, %c0_19] : memref<216x128xf32, #tpu.memory_space<vmem>>, vector<32x128xf32>
    %cst_20 = arith.constant dense<0.000000e+00> : vector<8x128xf32>
    %71 = tpu.matmul %69, %70, %cst_20 {dimension_numbers = #tpu.dot_dimension_numbers<[1], [0], [0], [1], [0, 0, 1, 1], [], []>} : vector<8x32xf32>, vector<32x128xf32>, vector<8x128xf32> -> vector<8x128xf32>
    %72 = vector.extract_strided_slice %40 {offsets = [0, 0], sizes = [8, 16], strides = [1, 1]} : vector<8x128xf32> to vector<8x16xf32>
    %c80 = arith.constant 80 : index
    %c0_21 = arith.constant 0 : index
    %73 = vector.load %arg3[%c80, %c0_21] : memref<216x128xf32, #tpu.memory_space<vmem>>, vector<16x128xf32>
    %cst_22 = arith.constant dense<0.000000e+00> : vector<8x128xf32>
    %74 = tpu.matmul %72, %73, %cst_22 {dimension_numbers = #tpu.dot_dimension_numbers<[1], [0], [0], [1], [0, 0, 1, 1], [], []>} : vector<8x16xf32>, vector<16x128xf32>, vector<8x128xf32> -> vector<8x128xf32>
    %75 = vector.extract_strided_slice %71 {offsets = [0, 0], sizes = [8, 16], strides = [1, 1]} : vector<8x128xf32> to vector<8x16xf32>
    %c96 = arith.constant 96 : index
    %c0_23 = arith.constant 0 : index
    %76 = vector.load %arg3[%c96, %c0_23] : memref<216x128xf32, #tpu.memory_space<vmem>>, vector<16x128xf32>
    %cst_24 = arith.constant dense<0.000000e+00> : vector<8x128xf32>
    %77 = tpu.matmul %75, %76, %cst_24 {dimension_numbers = #tpu.dot_dimension_numbers<[1], [0], [0], [1], [0, 0, 1, 1], [], []>} : vector<8x16xf32>, vector<16x128xf32>, vector<8x128xf32> -> vector<8x128xf32>
    %78 = arith.addf %74, %77 : vector<8x128xf32>
    %79 = vector.extract_strided_slice %0 {offsets = [3, 0], sizes = [1, 128], strides = [1, 1]} : vector<8x128xf32> to vector<1x128xf32>
    %80 = vector.broadcast %79 : vector<1x128xf32> to vector<8x128xf32>
    %81 = arith.addf %78, %80 : vector<8x128xf32>
    %cst_25 = arith.constant 0.000000e+00 : f32
    %82 = vector.broadcast %cst_25 : f32 to vector<8x128xf32>
    %83 = arith.maximumf %81, %82 : vector<8x128xf32>
    %84 = vector.extract_strided_slice %83 {offsets = [0, 0], sizes = [8, 32], strides = [1, 1]} : vector<8x128xf32> to vector<8x32xf32>
    %c112 = arith.constant 112 : index
    %c0_26 = arith.constant 0 : index
    %85 = vector.load %arg3[%c112, %c0_26] : memref<216x128xf32, #tpu.memory_space<vmem>>, vector<32x128xf32>
    %cst_27 = arith.constant dense<0.000000e+00> : vector<8x128xf32>
    %86 = tpu.matmul %84, %85, %cst_27 {dimension_numbers = #tpu.dot_dimension_numbers<[1], [0], [0], [1], [0, 0, 1, 1], [], []>} : vector<8x32xf32>, vector<32x128xf32>, vector<8x128xf32> -> vector<8x128xf32>
    %87 = vector.extract_strided_slice %0 {offsets = [4, 0], sizes = [1, 128], strides = [1, 1]} : vector<8x128xf32> to vector<1x128xf32>
    %88 = vector.broadcast %87 : vector<1x128xf32> to vector<8x128xf32>
    %89 = arith.addf %86, %88 : vector<8x128xf32>
    %cst_28 = arith.constant 0.000000e+00 : f32
    %90 = vector.broadcast %cst_28 : f32 to vector<8x128xf32>
    %91 = arith.maximumf %89, %90 : vector<8x128xf32>
    %92 = vector.extract_strided_slice %91 {offsets = [0, 0], sizes = [8, 32], strides = [1, 1]} : vector<8x128xf32> to vector<8x32xf32>
    %c144 = arith.constant 144 : index
    %c0_29 = arith.constant 0 : index
    %93 = vector.load %arg3[%c144, %c0_29] : memref<216x128xf32, #tpu.memory_space<vmem>>, vector<32x128xf32>
    %cst_30 = arith.constant dense<0.000000e+00> : vector<8x128xf32>
    %94 = tpu.matmul %92, %93, %cst_30 {dimension_numbers = #tpu.dot_dimension_numbers<[1], [0], [0], [1], [0, 0, 1, 1], [], []>} : vector<8x32xf32>, vector<32x128xf32>, vector<8x128xf32> -> vector<8x128xf32>
    %95 = vector.extract_strided_slice %0 {offsets = [5, 0], sizes = [1, 128], strides = [1, 1]} : vector<8x128xf32> to vector<1x128xf32>
    %96 = vector.broadcast %95 : vector<1x128xf32> to vector<8x128xf32>
    %97 = arith.addf %94, %96 : vector<8x128xf32>
    %98 = vector.extract_strided_slice %97 {offsets = [0, 0], sizes = [8, 32], strides = [1, 1]} : vector<8x128xf32> to vector<8x32xf32>
    %c176 = arith.constant 176 : index
    %c0_31 = arith.constant 0 : index
    %99 = vector.load %arg3[%c176, %c0_31] : memref<216x128xf32, #tpu.memory_space<vmem>>, vector<32x128xf32>
    %cst_32 = arith.constant dense<0.000000e+00> : vector<8x128xf32>
    %100 = tpu.matmul %98, %99, %cst_32 {dimension_numbers = #tpu.dot_dimension_numbers<[1], [0], [0], [1], [0, 0, 1, 1], [], []>} : vector<8x32xf32>, vector<32x128xf32>, vector<8x128xf32> -> vector<8x128xf32>
    %101 = vector.extract_strided_slice %0 {offsets = [6, 0], sizes = [1, 128], strides = [1, 1]} : vector<8x128xf32> to vector<1x128xf32>
    %102 = vector.broadcast %101 : vector<1x128xf32> to vector<8x128xf32>
    %103 = arith.addf %100, %102 : vector<8x128xf32>
    %c32_i32 = arith.constant 32 : i32
    %104 = vector.broadcast %c32_i32 : i32 to vector<8x128xi32>
    %105 = arith.cmpi slt, %1, %104 : vector<8x128xi32>
    %cst_33 = arith.constant 0xFF800000 : f32
    %106 = vector.broadcast %cst_33 : f32 to vector<8x128xf32>
    %107 = arith.select %105, %103, %106 : vector<8x128xi1>, vector<8x128xf32>
    %cst_34 = arith.constant dense<0xFF800000> : vector<8xf32>
    %108 = vector.multi_reduction <maximumf>, %107, %cst_34 [1] : vector<8x128xf32> to vector<8xf32>
    %109 = vector.shape_cast %108 : vector<8xf32> to vector<8x1xf32>
    %110 = vector.broadcast %109 : vector<8x1xf32> to vector<8x128xf32>
    %111 = arith.subf %107, %110 : vector<8x128xf32>
    %112 = math.exp %111 : vector<8x128xf32>
    %cst_35 = arith.constant dense<0.000000e+00> : vector<8xf32>
    %113 = vector.multi_reduction <add>, %112, %cst_35 [1] : vector<8x128xf32> to vector<8xf32>
    %114 = vector.shape_cast %113 : vector<8xf32> to vector<8x1xf32>
    %115 = vector.broadcast %114 : vector<8x1xf32> to vector<8x128xf32>
    %116 = arith.divf %112, %115 : vector<8x128xf32>
    %117 = vector.extract_strided_slice %0 {offsets = [7, 0], sizes = [1, 128], strides = [1, 1]} : vector<8x128xf32> to vector<1x128xf32>
    %cst_36 = arith.constant 0.000000e+00 : f32
    %118 = vector.broadcast %cst_36 : f32 to vector<8x128xf32>
    %119 = arith.maximumf %103, %118 : vector<8x128xf32>
    %120 = vector.broadcast %117 : vector<1x128xf32> to vector<8x128xf32>
    %121 = arith.mulf %119, %120 : vector<8x128xf32>
    %cst_37 = arith.constant dense<0.000000e+00> : vector<8xf32>
    %122 = vector.multi_reduction <add>, %121, %cst_37 [1] : vector<8x128xf32> to vector<8xf32>
    %123 = vector.shape_cast %122 : vector<8xf32> to vector<8x1xf32>
    %c64_i32 = arith.constant 64 : i32
    %124 = vector.broadcast %c64_i32 : i32 to vector<8x128xi32>
    %125 = arith.cmpi eq, %1, %124 : vector<8x128xi32>
    %126 = vector.shape_cast %123 : vector<8x1xf32> to vector<8x1xf32>
    %127 = vector.broadcast %126 : vector<8x1xf32> to vector<8x128xf32>
    %128 = arith.select %125, %127, %116 : vector<8x128xi1>, vector<8x128xf32>
    %c0_38 = arith.constant 0 : index
    %c0_39 = arith.constant 0 : index
    %129 = vector.load %arg4[%c0_38, %c0_39] : memref<8x128xf32, #tpu.memory_space<vmem>>, vector<8x128xf32>
    tpu.vector_store %arg4[%c0_38, %c0_39], %128 {strides = array<i32>} : memref<8x128xf32, #tpu.memory_space<vmem>>, vector<8x128xf32>,
    return
  }
  func.func @transform_0(%arg0: i32) -> (i32, i32) {
    %c0_i32 = arith.constant 0 : i32
    %c0_i32_0 = arith.constant 0 : i32
    return %arg0, %c0_i32 : i32, i32
  }
  func.func @transform_1(%arg0: i32) -> (i32, i32) {
    %c0_i32 = arith.constant 0 : i32
    %c0_i32_0 = arith.constant 0 : i32
    return %arg0, %c0_i32 : i32, i32
  }
  func.func @transform_2(%arg0: i32) -> (i32, i32) {
    %c0_i32 = arith.constant 0 : i32
    %c0_i32_0 = arith.constant 0 : i32
    %c0_i32_1 = arith.constant 0 : i32
    return %c0_i32, %c0_i32_0 : i32, i32
  }
  func.func @transform_3(%arg0: i32) -> (i32, i32) {
    %c0_i32 = arith.constant 0 : i32
    %c0_i32_0 = arith.constant 0 : i32
    return %arg0, %c0_i32 : i32, i32
  }
}

</mosaic_0001>

<bundles_post_ra>
// kernel: _forward.1
= control target key start
LH: loop header
LB: loop body
LE: loop exit
PB: predicated region body
PF: predicated region fallthrough
CT: control target
= control target key end

     0   :  { %8 = vsyncpa [#allocation3], 0  ;;  %s471_s15 = smov [#allocation2]   ;;  %s472_s17 = smov 128   ;;  %s539_s0 = inlined_call_operand.vmem [shape: s32[8,4], index: 0, kind: input, shape index: {}]   ;;  %s540_s1 = inlined_call_operand.vmem [shape: f32[8,128], index: 1, kind: input, shape index: {}]   ;;  %s541_s2 = inlined_call_operand.hbm [shape: f32[216,128], index: 2, kind: input, shape index: {}]   ;;  %s542_s3 = inlined_call_operand.vmem [shape: f32[8,128], index: 3, kind: output, shape index: {}]  }
   0x1   :  { %s17_s14 = sshll.u32 %s541_s2, 4  ;;  %s19_s16 = sshll.u32 %s471_s15, 4  ;;  %s18_s14 = int_to_ptr.hbm [resolvable:$true] %s17_s14  ;;  %s20_s16 = int_to_ptr.vmem [resolvable:$true] %s19_s16 }
   0x2   :  { %s473_s18 = smov 8  }
   0x3   :  { %25 = dma.hbm_to_vmem [thread:$0]  %s18_s14, 3456, %s20_s16, [#allocation3], %s472_s17, %s472_s17, %s473_s18  }
   0x4   :  { %469 = dma.done.wait [#allocation3], 3456  }
   0x5   :  { %470 = vsyncadd [#allocation3], 4294963840  ;;  %v33_v0 = vld [vmem:[%s540_s1] sm:$0xff]  ;;  %v70_v5 = vld [vmem:[#allocation2 + $0x8] sm:$0xff]  ;;  %vm71_vm0 = vcmask 64512   ;;  %v474_v34 = vmov 1   ;;  %v31_v45 = vlaneseq }
   0x6   :  { %v34_v1 = vmul.f32 %v33_v0, %v33_v0  ;;  %v65_v2 = vand.u32 2147483647, %v33_v0  ;;  %v69_v6 = vld [vmem:[#allocation2] sm:$0xff]  ;;  %90 = vmatpush.msra.mxu0 %v70_v5  ;;  %v122_v31 = vld [vmem:[#allocation2 + $0x18] sm:$0xff]  ;;  %v121_v32 = vld [vmem:[#allocation2 + $0x10] sm:$0xff]  ;;  %431 = vset.pattern.permute.xlu1 %v474_v34  ;;  %v475_v35 = vmov 0  }
   0x7   :  { %113 = vmatpush.msra.mxu1 %v69_v6  ;;  %142 = vmatpush.msra.mxu2 %v122_v31  ;;  %v175_v33 = vld [vmem:[%s539_s0] sm:$0xff]  ;;  %v476_v36 = vmov 3   ;;  %v477_v37 = vmov 2   ;;  %v510_v38 = vld [vmem:[#allocation2 + $0xd0] sm:$0xff]  ;;  %vm124_vm7 = vcmask 130048   ;;  %v514_v47 = vand.u32 127, %v31_v45 }
   0x8   :  { %35 = vadd.xlane.f32.xlu0 %v34_v1  ;;  %v66_v3 = vadd.f32 1e-07, %v65_v2  ;;  %184 = vperm.xlu1 %431, %v175_v33   ;;  %v118_v40 = vperm.slane %v510_v38, 0  ;;  %v478_v48 = vmov 0.0   ;;  %v150_v51 = vld [vmem:[#allocation2 + $0x28] sm:$0xff]  ;;  %v149_v54 = vld [vmem:[#allocation2 + $0x20] sm:$0xff] }
   0x9   :  { %143 = vmatpush.msra.mxu2 %v121_v32  ;;  %430 = vset.pattern.permute.xlu0 %v475_v35  ;;  %v208_v57 = vld [vmem:[#allocation2 + $0x48] sm:$0xff]  ;;  %v207_v60 = vld [vmem:[#allocation2 + $0x40] sm:$0xff]  ;;  %v206_v61 = vld [vmem:[#allocation2 + $0x38] sm:$0xff]  ;;  %vm209_vm12 = vcmask 261120   ;;  %v123_v5 = vperm.slane %v510_v38, 1  ;;  %v290_v31 = vperm.slane %v510_v38, 4 }
   0xa   :  { %435 = vlog2.f32 %v66_v3  ;;  %433 = vset.pattern.permute.xlu2 %v476_v36  ;;  %169 = vmatpush.msra.mxu3 %v150_v51  ;;  %v234_v63 = vld [vmem:[#allocation2 + $0x58] sm:$0xff]  ;;  %v233_v1 = vld [vmem:[#allocation2 + $0x50] sm:$0xff]  ;;  %vm371_vm13 = vcmp.lt.s32.totalorder %v514_v47, 32 }
   0xb   :  { %198 = vperm.xlu2 %433, %v175_v33   ;;  %225 = vmatpush.msrb.mxu0 %v208_v57  ;;  %v205_v3 = vld [vmem:[#allocation2 + $0x30] sm:$0xff] }
   0xc   :  { %170 = vmatpush.msra.mxu3 %v149_v54  ;;  %277 = vmatpush.msrb.mxu2 %v234_v63  ;;  %v343_v35 = vld [vmem:[#allocation2 + $0xb0] sm:$0xff] }
   0xd   :  { %226 = vmatpush.msrb.mxu0 %v207_v60 }
   0xe   :  { %278 = vmatpush.msrb.mxu2 %v233_v1 }
   0xf   :  { %227 = vmatpush.msrb.mxu0 %v206_v61 }
  0x10   :  { %v436_v4 = vpop.eup %435  ;;  %432 = vset.pattern.permute.xlu1 %v477_v37 }
  0x11   :  { %v68_v7 = vmul.f32 0.6931472, %v436_v4  ;;  %191 = vperm.xlu1 %432, %v175_v33   ;;  %228 = vmatpush.msrb.mxu0 %v205_v3 }
  0x13   :  { %408 = vmatmul.msk.f32.vlgmr.msra.gmra.mxu0 %vm71_vm0, %v68_v7 }
  0x1c   :  { %177 = vperm.xlu0 %430, %v175_v33  }
  0x24   :  { %434 = vset.pattern.permute.xlu0 %v476_v36  ;;  %v319_v36 = vperm.slane %v510_v38, 5 }
  0x65   :  { %v199_v55 = vpop.permute.xlu2 %198 }
  0x66   :  { %vm200_vm11 = vcmp.eq.s32.totalorder %v199_v55, %v514_v47 }
  0x67   :  { %v415_v59 = vsel %vm200_vm11, 1.0, %v478_v48 }
  0x7a   :  { %v185_v46 = vpop.permute.xlu1 %184 }
  0x7b   :  { %v36_v8 = vpop.xlane.xlu0 %35  ;;  %vm186_vm8 = vcmp.eq.s32.totalorder %v185_v46, %v514_v47 }
  0x7c   :  { %437 = vrsqrt.f32 %v36_v8  ;;  %vm44_vm1 = vcmp.eq.f32.partialorder %v36_v8, inf  ;;  %v47_v16 = vand.u32 2147483648, %v36_v8  ;;  %vm46_vm2 = vcmp.eq.f32.partialorder %v36_v8, 0.0 }
  0x7d   :  { %v413_v49 = vsel %vm186_vm8, 1.0, %v478_v48 }
  0x82   :  { %v438_v9 = vpop.eup %437 }
  0x83   :  { %v38_v10 = vmul.f32 %v438_v9, %v36_v8  ;;  %v192_v53 = vpop.permute.xlu1 %191 }
  0x84   :  { %vm193_vm10 = vcmp.eq.s32.totalorder %v192_v53, %v514_v47 }
  0x85   :  { %v39_v11 = vmul.f32 %v438_v9, %v38_v10  ;;  %v414_v58 = vsel %vm193_vm10, 1.0, %v478_v48 }
  0x87   :  { %v40_v12 = vmul.f32 0.5, %v39_v11  ;;  %v151_v11 = vperm.slane %v510_v38, 2 }
  0x89   :  { %v41_v13 = vsub.f32 1.5, %v40_v12 }
  0x8b   :  { %v42_v14 = vmul.f32 %v438_v9, %v41_v13  ;;  %v235_v9 = vld [vmem:[#allocation2 + $0x60] sm:$0xff] }
  0x8d   :  { %v43_v15 = vmul.f32 %v42_v14, %v36_v8  ;;  %v289_v14 = vld [vmem:[#allocation2 + $0x88] sm:$0xff] }
  0x8e   :  { %v178_v50 = vpop.permute.xlu0 %177  ;;  %306 = vmatpush.msrb.mxu3 %v289_v14 }
  0x8f   :  { %v45_v17 = vsel %vm44_vm1, %v36_v8, %v43_v15  ;;  %vm179_vm9 = vcmp.eq.s32.totalorder %v178_v50, %v514_v47  ;;  %v288_v15 = vld [vmem:[#allocation2 + $0x80] sm:$0xff] }
  0x90   :  { %v48_v18 = vsel %vm46_vm2, %v47_v16, %v45_v17  ;;  %v92_v39 = vpop.f32.mrf.mxu0  ;;  %v412_v52 = vsel %vm179_vm9, 1.0, %v478_v48  ;;  %307 = vmatpush.msrb.mxu3 %v288_v15  ;;  %v287_v16 = vld [vmem:[#allocation2 + $0x78] sm:$0xff]  ;;  %v286_v17 = vld [vmem:[#allocation2 + $0x70] sm:$0xff]  ;;  %vm400_vm2 = vcmp.eq.s32.totalorder %v514_v47, 64 }
  0x91   :  { %v49_v19 = vmax.f32 %v48_v18, 1e-12  ;;  %v189_v56 = vadd.f32 %v413_v49, %v412_v52  ;;  %v318_v18 = vld [vmem:[#allocation2 + $0xa8] sm:$0xff] }
  0x92   :  { %308 = vmatpush.msrb.mxu3 %v287_v16  ;;  %335 = vmatpush.msra.mxu0 %v318_v18 }
  0x93   :  { %439 = vrcp.f32 %v49_v19  ;;  %v61_v23 = vand.u32 2147483648, %v49_v19  ;;  %v59_v25 = vand.u32 2147483647, %v49_v19  ;;  %vm55_vm4 = vweird.f32 %v49_v19 }
  0x94   :  { %v196_v62 = vadd.f32 %v414_v58, %v189_v56  ;;  %309 = vmatpush.msrb.mxu3 %v286_v17 }
  0x95   :  { %v62_v27 = vor.u32 1.1754944e-38, %v61_v23  ;;  %vm60_vm6 = vcmp.eq.f32.partialorder %v59_v25, 8.507059e+37 }
  0x96   :  { %v203_v2 = vadd.f32 %v415_v59, %v196_v62 }
  0x98   :  { %v204_v4 = vmul.f32 0.25, %v203_v2 }
  0x99   :  { %v440_v20 = vpop.eup %439 }
  0x9a   :  { %v51_v21 = vmul.f32 %v440_v20, %v49_v19  ;;  %vm56_vm3 = vweird.f32 %v440_v20  ;;  %416 = vmatmul.msk.f32.vlgmr.msrb.gmra.mxu0 %vm209_vm12, %v204_v4  ;;  %v317_v19 = vld [vmem:[#allocation2 + $0xa0] sm:$0xff] }
  0x9b   :  { %vm57_vm5 = vmor %vm55_vm4, %vm56_vm3  ;;  %336 = vmatpush.msra.mxu0 %v317_v19 }
  0x9c   :  { %v52_v22 = vsub.f32 1.0, %v51_v21 }
  0x9e   :  { %v53_v24 = vmul.f32 %v440_v20, %v52_v22 }
  0xa0   :  { %v54_v26 = vadd.f32 %v440_v20, %v53_v24 }
  0xa2   :  { %v58_v28 = vsel %vm57_vm5, %v440_v20, %v54_v26  ;;  %v283_v20 = vperm.slane %v510_v38, 3  ;;  %v316_v26 = vld [vmem:[#allocation2 + $0x98] sm:$0xff] }
  0xa3   :  { %v63_v29 = vsel %vm60_vm6, %v62_v27, %v58_v28  ;;  %337 = vmatpush.msra.mxu0 %v316_v26  ;;  %v315_v27 = vld [vmem:[#allocation2 + $0x90] sm:$0xff]  ;;  %v346_v28 = vld [vmem:[#allocation2 + $0xc8] sm:$0xff] }
  0xa4   :  { %v64_v30 = vmul.f32 %v63_v29, %v33_v0  ;;  %v236_v0 = vld [vmem:[#allocation2 + $0x68] sm:$0xff]  ;;  %v345_v29 = vld [vmem:[#allocation2 + $0xc0] sm:$0xff] }
  0xa5   :  { %254 = vmatpush.msrb.mxu1 %v236_v0  ;;  %338 = vmatpush.msra.mxu0 %v315_v27 }
  0xa6   :  { %409 = vmatmul.msk.f32.vlgmr.msra.gmra.mxu1 %vm71_vm0, %v64_v30  ;;  %v344_v30 = vld [vmem:[#allocation2 + $0xb8] sm:$0xff] }
  0xa7   :  { %255 = vmatpush.msrb.mxu1 %v235_v9 }
  0xa9   :  { %363 = vmatpush.msra.mxu1 %v346_v28 }
  0xab   :  { %364 = vmatpush.msra.mxu1 %v345_v29 }
  0xad   :  { %365 = vmatpush.msra.mxu1 %v344_v30 }
  0xaf   :  { %366 = vmatpush.msra.mxu1 %v343_v35 }
 0x117   :  { %v230_v10 = vpop.f32.mrf.mxu0 }
 0x118   :  { %417 = vmatmul.msk.f32.vlgmr.msrb.gmra.mxu1 %vm124_vm7, %v230_v10 }
 0x123   :  { %v115_v41 = vpop.f32.mrf.mxu1 }
 0x124   :  { %v116_v42 = vadd.f32 %v115_v41, %v92_v39 }
 0x126   :  { %v119_v43 = vadd.f32 %v118_v40, %v116_v42  ;;  %v347_v40 = vperm.slane %v510_v38, 6 }
 0x128   :  { %v120_v44 = vmax.f32 %v119_v43, 0.0  ;;  %v396_v43 = vperm.slane %v510_v38, 7 }
 0x12a   :  { %410 = vmatmul.msk.f32.vlgmr.msra.gmra.mxu2 %vm124_vm7, %v120_v44 }
 0x195   :  { %v257_v21 = vpop.f32.mrf.mxu1 }
 0x1ad   :  { %v145_v6 = vpop.f32.mrf.mxu2 }
 0x1ae   :  { %v146_v7 = vadd.f32 %v145_v6, %v123_v5 }
 0x1b0   :  { %v148_v8 = vmax.f32 %v146_v7, 0.0 }
 0x1b2   :  { %411 = vmatmul.msk.f32.vlgmr.msra.gmra.mxu3 %vm124_vm7, %v148_v8 }
 0x235   :  { %v172_v12 = vpop.f32.mrf.mxu3 }
 0x236   :  { %v173_v13 = vadd.f32 %v172_v12, %v151_v11 }
 0x238   :  { %418 = vmatmul.msk.f32.vlgmr.msrb.gmra.mxu2 %vm124_vm7, %v173_v13 }
 0x2bb   :  { %v280_v22 = vpop.f32.mrf.mxu2 }
 0x2bc   :  { %v281_v23 = vadd.f32 %v280_v22, %v257_v21 }
 0x2be   :  { %v284_v24 = vadd.f32 %v283_v20, %v281_v23 }
 0x2c0   :  { %v285_v25 = vmax.f32 %v284_v24, 0.0 }
 0x2c2   :  { %419 = vmatmul.msk.f32.vlgmr.msrb.gmra.mxu3 %vm209_vm12, %v285_v25 }
 0x345   :  { %v311_v32 = vpop.f32.mrf.mxu3 }
 0x346   :  { %v312_v33 = vadd.f32 %v311_v32, %v290_v31 }
 0x348   :  { %v314_v34 = vmax.f32 %v312_v33, 0.0 }
 0x34a   :  { %420 = vmatmul.msk.f32.vlgmr.msra.gmra.mxu0 %vm209_vm12, %v314_v34 }
 0x3c7   :  { %v340_v37 = vpop.f32.mrf.mxu0 }
 0x3c8   :  { %v341_v39 = vadd.f32 %v340_v37, %v319_v36 }
 0x3ca   :  { %421 = vmatmul.msk.f32.vlgmr.msra.gmra.mxu1 %vm209_vm12, %v341_v39 }
 0x447   :  { %v368_v41 = vpop.f32.mrf.mxu1 }
 0x448   :  { %v369_v42 = vadd.f32 %v368_v41, %v347_v40 }
 0x44a   :  { %v395_v44 = vmax.f32 %v369_v42, 0.0  ;;  %v372_v45 = vsel %vm371_vm13, %v369_v42, -inf }
 0x44b   :  { %373 = vmax.xlane.f32.xlu2 %v372_v45 }
 0x44c   :  { %v397_v46 = vmul.f32 %v396_v43, %v395_v44 }
 0x44e   :  { %398 = vadd.xlane.f32.xlu0 %v397_v46 }
 0x4be   :  { %v374_v48 = vpop.xlane.xlu2 %373 }
 0x4bf   :  { %v375_v49 = vsub.f32 %v372_v45, %v374_v48 }
 0x4c1   :  { %v376_v50 = vmul.f32 1.442695, %v375_v49  ;;  %v399_v63 = vpop.xlane.xlu0 %398 }
 0x4c3   :  { %441 = vpow2.f32 %v376_v50 }
 0x4c9   :  { %v442_v51 = vpop.eup %441 }
 0x4ca   :  { %378 = vadd.xlane.f32.xlu1 %v442_v51 }
 0x53d   :  { %v379_v52 = vpop.xlane.xlu1 %378 }
 0x53e   :  { %443 = vrcp.f32 %v379_v52  ;;  %v391_v56 = vand.u32 2147483648, %v379_v52  ;;  %v389_v38 = vand.u32 2147483647, %v379_v52  ;;  %vm385_vm15 = vweird.f32 %v379_v52 }
 0x540   :  { %v392_v59 = vor.u32 1.1754944e-38, %v391_v56  ;;  %vm390_vm1 = vcmp.eq.f32.partialorder %v389_v38, 8.507059e+37 }
 0x544   :  { %v444_v53 = vpop.eup %443 }
 0x545   :  { %v381_v54 = vmul.f32 %v444_v53, %v379_v52  ;;  %vm386_vm14 = vweird.f32 %v444_v53 }
 0x546   :  { %vm387_vm0 = vmor %vm385_vm15, %vm386_vm14 }
 0x547   :  { %v382_v55 = vsub.f32 1.0, %v381_v54 }
 0x549   :  { %v383_v57 = vmul.f32 %v444_v53, %v382_v55 }
 0x54b   :  { %v384_v58 = vadd.f32 %v444_v53, %v383_v57 }
 0x54d   :  { %v388_v60 = vsel %vm387_vm0, %v444_v53, %v384_v58 }
 0x54e   :  { %v393_v61 = vsel %vm390_vm1, %v392_v59, %v388_v60 }
 0x54f   :  { %v394_v62 = vmul.f32 %v442_v51, %v393_v61 }
 0x551   :  { %v401_v0 = vsel %vm400_vm2, %v399_v63, %v394_v62 }
 0x552   :  { %402 = vst [vmem:[%s542_s3] sm:$0xff] %v401_v0 }
 0x553   :  { %407 = vsyncpa [#allocation3], 1 }

</bundles_post_ra>
